<compile_context>
chip_gen: v6e
topology: v6e:2x2x1
jax: 0.10.0
libtpu: 0.0.40
codegen_flags: <defaults>
</compile_context>

<pallas_src>
import jax
import jax.numpy as jnp
from jax import lax
from jax.experimental import pallas as pl
from jax.experimental.pallas import tpu as pltpu

_LN_EPS = 1e-5  # nn.LayerNorm default


# ----------------------- shared elementwise math helpers -----------------------
def _silu(x):
    return x * jax.nn.sigmoid(x)


def _gelu_exact(x):
    # nn.GELU() default = exact erf variant
    return 0.5 * x * (1.0 + lax.erf(x * 0.7071067811865476))


def _layer_norm(x):
    mu = jnp.mean(x, axis=-1, keepdims=True)
    var = jnp.mean(jnp.square(x - mu), axis=-1, keepdims=True)
    return (x - mu) * lax.rsqrt(var + _LN_EPS)


# --------------------------------- Pallas kernel --------------------------------
def _mylinear_kernel(t_ref, x_ref, mod_tab_ref, sig_ref,
                     w_in_ref, w_body_ref, b_all_ref, out_ref):
    c_out = out_ref.shape[-1]
    f32, bf16 = jnp.float32, jnp.bfloat16

    # Packed biases: [b_in | b1 | b2]  (lane-aligned slices, c_out % 128 == 0)
    b_in = b_all_ref[:, 0 * c_out:1 * c_out]
    b1 = b_all_ref[:, 1 * c_out:2 * c_out]
    b2 = b_all_ref[:, 2 * c_out:3 * c_out]

    # Shared MyAdaLayerNorm modulation: precomputed table, gather one row.
    t = t_ref[0]                                   # SMEM scalar (reps == 1)
    mod = mod_tab_ref[pl.ds(t, 1), :]              # (1, 2*c_out) f32
    scale = mod[:, :c_out]
    shift = mod[:, c_out:]

    def ada_ln(h):
        return _layer_norm(h) * (1.0 + scale) + shift

    # in_layer + norm_in
    h = jnp.dot(x_ref[...].astype(bf16), w_in_ref[...],
                preferred_element_type=f32) + b_in
    h = ada_ln(h)

    # repeat (reps == 1) then add the spatial mean of sig.  sig arrives
    # channel-major (c_out, h*w); the mean over spatial plus the
    # channel->lane layout change are done together as one tiny contraction.
    hw = sig_ref.shape[-1]
    mean_w = jnp.full((1, hw), 1.0 / hw, dtype=f32)
    sig_mean = lax.dot_general(mean_w, sig_ref[...],
                               dimension_numbers=(((1,), (1,)), ((), ())),
                               preferred_element_type=f32)        # (1, c_out)
    h = h + sig_mean

    # body: [Linear, GELU, MyAdaLayerNorm] x 2 (AdaLN modulation shared)
    h = jnp.dot(h.astype(bf16), w_body_ref[0], preferred_element_type=f32) + b1
    h = ada_ln(_gelu_exact(h))
    h = jnp.dot(h.astype(bf16), w_body_ref[1], preferred_element_type=f32) + b2
    h = ada_ln(_gelu_exact(h))

    out_ref[...] = h.astype(out_ref.dtype)


# --------------------------- one-time parameter packing -------------------------
def pack_params(p):
    """Repack torch-layout f32 params into the kernel layout (call ONCE)."""
    to_bf16_t = lambda w: jnp.asarray(w, jnp.float32).T.astype(jnp.bfloat16)
    # Constant-fold the AdaLN modulation for every timestep id (params only):
    # mod_table[t] = SiLU(emb_table[t]) @ w_ada^T + b_ada        (n_emb, 2*c_out)
    emb = jnp.asarray(p["emb_table"], jnp.float32)
    mod_table = _silu(emb) @ jnp.asarray(p["w_ada"], jnp.float32).T + p["b_ada"]
    return dict(
        mod_table=mod_table.astype(jnp.float32),                   # (n_emb, 2c)
        w_in=to_bf16_t(p["w_in"]),                                 # (c_in, c)
        w_body=jnp.stack([to_bf16_t(p["w1"]), to_bf16_t(p["w2"])], axis=0),
        b_all=jnp.concatenate(
            [p["b_in"], p["b1"], p["b2"]]).astype(jnp.float32)[None, :],  # (1,3c)
    )


# ----------------------------------- wrapper ------------------------------------
@jax.jit
def mylinear_forward(x, timestep, sig, packed):
    b, f, c_in = x.shape
    bs, c_out, hs, ws = sig.shape
    # Exact-module constraint (see header comment): reps == 1.
    assert b == 1 and f == 1 and bs == 1

    x2 = x.reshape(b * f, c_in).astype(jnp.float32)          # (1, c_in)
    sig2 = sig.reshape(c_out, hs * ws).astype(jnp.float32)   # (c, h*w), no transpose
    t_i32 = timestep.astype(jnp.int32)                       # (bs,)

    mod_table = packed["mod_table"]
    w_in = packed["w_in"]
    w_body = packed["w_body"]
    b_all = packed["b_all"]

    hw = hs * ws
    flops = int(2 * c_in * c_out + 4 * c_out * c_out + 2 * hw * c_out
                + 40 * c_out)
    transcendentals = int(2 * c_out + 8)
    bytes_accessed = int(x2.size * 4 + t_i32.size * 4 + mod_table.size * 4
                         + sig2.size * 4 + w_in.size * 2 + w_body.size * 2
                         + b_all.size * 4 + c_out * 4)

    smem = pl.BlockSpec(memory_space=pltpu.MemorySpace.SMEM)
    vmem = pl.BlockSpec(memory_space=pltpu.MemorySpace.VMEM)
    out = pl.pallas_call(
        _mylinear_kernel,
        out_shape=jax.ShapeDtypeStruct((b * f, c_out), jnp.float32),
        in_specs=[smem, vmem, vmem, vmem, vmem, vmem, vmem],
        out_specs=vmem,
        cost_estimate=pl.CostEstimate(flops=flops,
                                      transcendentals=transcendentals,
                                      bytes_accessed=bytes_accessed),
    )(t_i32, x2, mod_table, sig2, w_in, w_body, b_all)

    # rearrange 'b (h w) c -> b c h w' with h = w = 1
    return out.reshape(bs, c_out, 1, 1)


# ------------------------------ pure-JAX reference ------------------------------
def _mm(a, w_t):
    # Matches the kernel's MXU numerics policy: bf16 operands, f32 accumulation.
    return jnp.dot(a.astype(jnp.bfloat16), w_t.astype(jnp.bfloat16),
                   preferred_element_type=jnp.float32)


def reference_forward(x, timestep, sig, p):
    """Faithful port of MyLinear.forward (ada_norm path), same precision policy
    as the kernel (bf16 matmul inputs / f32 accumulation, f32 elementwise)."""
    b, f, c_in = x.shape
    bs, c_out, hs, ws = sig.shape
    reps = bs // b

    def ada(h, t):
        e = p["emb_table"][t]
        e = _silu(e)
        e = e @ p["w_ada"].T + p["b_ada"]          # exact f32 (== packed table)
        scale, shift = e[..., :c_out], e[..., c_out:]
        return _layer_norm(h) * (1.0 + scale) + shift

    h = _mm(x, p["w_in"].T) + p["b_in"]
    h = ada(h, timestep[::reps])
    h = jnp.repeat(h, reps, axis=0)                     # 'b f c -> (b t) f c'
    sg = jnp.transpose(sig.reshape(bs, c_out, hs * ws), (0, 2, 1))
    h = h + jnp.mean(sg, axis=1, keepdims=True)
    for w, bb in ((p["w1"], p["b1"]), (p["w2"], p["b2"])):
        h = _mm(h, w.T) + bb
        h = _gelu_exact(h)
        h = ada(h, timestep)
    return jnp.transpose(h, (0, 2, 1)).reshape(bs, c_out, 1, 1)


# -------------------------------- param init ------------------------------------
def init_params(key, c_in, c_out, num_embeddings):
    ks = jax.random.split(key, 5)

    def linear(k, fan_in, fan_out):
        bound = 1.0 / jnp.sqrt(jnp.float32(fan_in))
        kw, kb = jax.random.split(k)
        w = jax.random.uniform(kw, (fan_out, fan_in), jnp.float32, -bound, bound)
        b = jax.random.uniform(kb, (fan_out,), jnp.float32, -bound, bound)
        return w, b

    w_in, b_in = linear(ks[0], c_in, c_out)
    emb_table = jax.random.normal(ks[1], (num_embeddings, c_out), jnp.float32)
    w_ada, b_ada = linear(ks[2], c_out, 2 * c_out)
    w1, b1 = linear(ks[3], c_out, c_out)
    w2, b2 = linear(ks[4], c_out, c_out)
    return dict(w_in=w_in, b_in=b_in, emb_table=emb_table,
                w_ada=w_ada, b_ada=b_ada, w1=w1, b1=b1, w2=w2, b2=b2)


if __name__ == "__main__":
    c_in, c_out = 128, 256
    hs = ws = 8
    num_embeddings = 16
    b, f, bs = 1, 1, 1                      # forced by the module's semantics

    key = jax.random.PRNGKey(0)
    kp, kx, ks, kt = jax.random.split(key, 4)
    params = init_params(kp, c_in, c_out, num_embeddings)
    packed = pack_params(params)            # one-time transpose / bf16 / fold
    x = jax.random.normal(kx, (b, f, c_in), jnp.float32)
    sig = jax.random.normal(ks, (bs, c_out, hs, ws), jnp.float32)
    timestep = jax.random.randint(kt, (bs,), 0, num_embeddings, dtype=jnp.int32)

    out = jax.block_until_ready(mylinear_forward(x, timestep, sig, packed))
    ref = jax.block_until_ready(reference_forward(x, timestep, sig, params))

    assert out.shape == (bs, c_out, 1, 1), out.shape
    # Kernel and reference use the same bf16-in / f32-accumulate matmul policy,
    # so only accumulation-order noise remains.
    assert bool(jnp.allclose(out, ref, atol=1e-2, rtol=1e-2)), \
        float(jnp.max(jnp.abs(out - ref)))
    print("KERNEL_OK")
</pallas_src>

<mosaic_0001>
module attributes {stable_mosaic.version = 11 : i64} {
  func.func @_mylinear_kernel(%arg0: memref<1xi32, #tpu.memory_space<smem>>, %arg1: memref<1x128xf32, #tpu.memory_space<vmem>>, %arg2: memref<16x512xf32, #tpu.memory_space<vmem>>, %arg3: memref<256x64xf32, #tpu.memory_space<vmem>>, %arg4: memref<128x256xbf16, #tpu.memory_space<vmem>>, %arg5: memref<2x256x256xbf16, #tpu.memory_space<vmem>>, %arg6: memref<1x768xf32, #tpu.memory_space<vmem>>, %arg7: memref<1x256xf32, #tpu.memory_space<vmem>>) attributes {dimension_semantics = [], scalar_prefetch = 0 : i64, scratch_operands = 0 : i64, tpu.core_type = #tpu.core_type<tc>} {
    %c0 = arith.constant 0 : index
    %c0_0 = arith.constant 0 : index
    %0 = vector.load %arg6[%c0, %c0_0] : memref<1x768xf32, #tpu.memory_space<vmem>>, vector<1x256xf32>
    %c0_1 = arith.constant 0 : index
    %c256 = arith.constant 256 : index
    %1 = vector.load %arg6[%c0_1, %c256] : memref<1x768xf32, #tpu.memory_space<vmem>>, vector<1x256xf32>
    %c0_2 = arith.constant 0 : index
    %c512 = arith.constant 512 : index
    %2 = vector.load %arg6[%c0_2, %c512] : memref<1x768xf32, #tpu.memory_space<vmem>>, vector<1x256xf32>
    %c0_3 = arith.constant 0 : index
    %3 = memref.load %arg0[%c0_3] : memref<1xi32, #tpu.memory_space<smem>>
    %4 = arith.index_cast %3 : i32 to index
    %c0_4 = arith.constant 0 : index
    %5 = vector.load %arg2[%4, %c0_4] : memref<16x512xf32, #tpu.memory_space<vmem>>, vector<1x512xf32>
    %6 = vector.extract_strided_slice %5 {offsets = [0, 0], sizes = [1, 256], strides = [1, 1]} : vector<1x512xf32> to vector<1x256xf32>
    %7 = vector.extract_strided_slice %5 {offsets = [0, 256], sizes = [1, 256], strides = [1, 1]} : vector<1x512xf32> to vector<1x256xf32>
    %c0_5 = arith.constant 0 : index
    %c0_6 = arith.constant 0 : index
    %8 = vector.load %arg1[%c0_5, %c0_6] : memref<1x128xf32, #tpu.memory_space<vmem>>, vector<1x128xf32>
    %9 = arith.truncf %8 : vector<1x128xf32> to vector<1x128xbf16>
    %c0_7 = arith.constant 0 : index
    %c0_8 = arith.constant 0 : index
    %10 = vector.load %arg4[%c0_7, %c0_8] : memref<128x256xbf16, #tpu.memory_space<vmem>>, vector<128x256xbf16>
    %cst = arith.constant dense<0.000000e+00> : vector<1x256xf32>
    %11 = tpu.matmul %9, %10, %cst {dimension_numbers = #tpu.dot_dimension_numbers<[1], [0], [0], [1], [0, 0, 1, 1], [], []>} : vector<1x128xbf16>, vector<128x256xbf16>, vector<1x256xf32> -> vector<1x256xf32>
    %12 = arith.addf %11, %0 : vector<1x256xf32>
    %cst_9 = arith.constant dense<0.000000e+00> : vector<1xf32>
    %13 = vector.multi_reduction <add>, %12, %cst_9 [1] : vector<1x256xf32> to vector<1xf32>
    %14 = vector.shape_cast %13 : vector<1xf32> to vector<1x1xf32>
    %cst_10 = arith.constant 2.560000e+02 : f32
    %15 = vector.broadcast %cst_10 : f32 to vector<1x1xf32>
    %16 = arith.divf %14, %15 : vector<1x1xf32>
    %17 = vector.broadcast %16 : vector<1x1xf32> to vector<1x256xf32>
    %18 = arith.subf %12, %17 : vector<1x256xf32>
    %19 = arith.mulf %18, %18 : vector<1x256xf32>
    %cst_11 = arith.constant dense<0.000000e+00> : vector<1xf32>
    %20 = vector.multi_reduction <add>, %19, %cst_11 [1] : vector<1x256xf32> to vector<1xf32>
    %21 = vector.shape_cast %20 : vector<1xf32> to vector<1x1xf32>
    %cst_12 = arith.constant 2.560000e+02 : f32
    %22 = vector.broadcast %cst_12 : f32 to vector<1x1xf32>
    %23 = arith.divf %21, %22 : vector<1x1xf32>
    %24 = vector.broadcast %16 : vector<1x1xf32> to vector<1x256xf32>
    %25 = arith.subf %12, %24 : vector<1x256xf32>
    %cst_13 = arith.constant 9.99999974E-6 : f32
    %26 = vector.broadcast %cst_13 : f32 to vector<1x1xf32>
    %27 = arith.addf %23, %26 : vector<1x1xf32>
    %28 = math.rsqrt %27 : vector<1x1xf32>
    %29 = vector.broadcast %28 : vector<1x1xf32> to vector<1x256xf32>
    %30 = arith.mulf %25, %29 : vector<1x256xf32>
    %cst_14 = arith.constant 1.000000e+00 : f32
    %31 = vector.broadcast %cst_14 : f32 to vector<1x256xf32>
    %32 = arith.addf %31, %6 : vector<1x256xf32>
    %33 = arith.mulf %30, %32 : vector<1x256xf32>
    %34 = arith.addf %33, %7 : vector<1x256xf32>
    %cst_15 = arith.constant 1.562500e-02 : f32
    %35 = vector.broadcast %cst_15 : f32 to vector<1x64xf32>
    %c0_16 = arith.constant 0 : index
    %c0_17 = arith.constant 0 : index
    %36 = vector.load %arg3[%c0_16, %c0_17] : memref<256x64xf32, #tpu.memory_space<vmem>>, vector<256x64xf32>
    %cst_18 = arith.constant dense<0.000000e+00> : vector<1x256xf32>
    %37 = tpu.matmul %35, %36, %cst_18 {dimension_numbers = #tpu.dot_dimension_numbers<[1], [1], [0], [0], [0, 0, 1, 0], [], []>} : vector<1x64xf32>, vector<256x64xf32>, vector<1x256xf32> -> vector<1x256xf32>
    %38 = arith.addf %34, %37 : vector<1x256xf32>
    %39 = arith.truncf %38 : vector<1x256xf32> to vector<1x256xbf16>
    %c0_19 = arith.constant 0 : index
    %c0_20 = arith.constant 0 : index
    %c0_21 = arith.constant 0 : index
    %40 = vector.load %arg5[%c0_19, %c0_20, %c0_21] : memref<2x256x256xbf16, #tpu.memory_space<vmem>>, vector<1x256x256xbf16>
    %41 = vector.shape_cast %40 : vector<1x256x256xbf16> to vector<256x256xbf16>
    %cst_22 = arith.constant dense<0.000000e+00> : vector<1x256xf32>
    %42 = tpu.matmul %39, %41, %cst_22 {dimension_numbers = #tpu.dot_dimension_numbers<[1], [0], [0], [1], [0, 0, 1, 1], [], []>} : vector<1x256xbf16>, vector<256x256xbf16>, vector<1x256xf32> -> vector<1x256xf32>
    %43 = arith.addf %42, %1 : vector<1x256xf32>
    %cst_23 = arith.constant 5.000000e-01 : f32
    %44 = vector.broadcast %cst_23 : f32 to vector<1x256xf32>
    %45 = arith.mulf %44, %43 : vector<1x256xf32>
    %cst_24 = arith.constant 0.707106769 : f32
    %46 = vector.broadcast %cst_24 : f32 to vector<1x256xf32>
    %47 = arith.mulf %43, %46 : vector<1x256xf32>
    %48 = math.erf %47 : vector<1x256xf32>
    %cst_25 = arith.constant 1.000000e+00 : f32
    %49 = vector.broadcast %cst_25 : f32 to vector<1x256xf32>
    %50 = arith.addf %49, %48 : vector<1x256xf32>
    %51 = arith.mulf %45, %50 : vector<1x256xf32>
    %cst_26 = arith.constant dense<0.000000e+00> : vector<1xf32>
    %52 = vector.multi_reduction <add>, %51, %cst_26 [1] : vector<1x256xf32> to vector<1xf32>
    %53 = vector.shape_cast %52 : vector<1xf32> to vector<1x1xf32>
    %cst_27 = arith.constant 2.560000e+02 : f32
    %54 = vector.broadcast %cst_27 : f32 to vector<1x1xf32>
    %55 = arith.divf %53, %54 : vector<1x1xf32>
    %56 = vector.broadcast %55 : vector<1x1xf32> to vector<1x256xf32>
    %57 = arith.subf %51, %56 : vector<1x256xf32>
    %58 = arith.mulf %57, %57 : vector<1x256xf32>
    %cst_28 = arith.constant dense<0.000000e+00> : vector<1xf32>
    %59 = vector.multi_reduction <add>, %58, %cst_28 [1] : vector<1x256xf32> to vector<1xf32>
    %60 = vector.shape_cast %59 : vector<1xf32> to vector<1x1xf32>
    %cst_29 = arith.constant 2.560000e+02 : f32
    %61 = vector.broadcast %cst_29 : f32 to vector<1x1xf32>
    %62 = arith.divf %60, %61 : vector<1x1xf32>
    %63 = vector.broadcast %55 : vector<1x1xf32> to vector<1x256xf32>
    %64 = arith.subf %51, %63 : vector<1x256xf32>
    %cst_30 = arith.constant 9.99999974E-6 : f32
    %65 = vector.broadcast %cst_30 : f32 to vector<1x1xf32>
    %66 = arith.addf %62, %65 : vector<1x1xf32>
    %67 = math.rsqrt %66 : vector<1x1xf32>
    %68 = vector.broadcast %67 : vector<1x1xf32> to vector<1x256xf32>
    %69 = arith.mulf %64, %68 : vector<1x256xf32>
    %cst_31 = arith.constant 1.000000e+00 : f32
    %70 = vector.broadcast %cst_31 : f32 to vector<1x256xf32>
    %71 = arith.addf %70, %6 : vector<1x256xf32>
    %72 = arith.mulf %69, %71 : vector<1x256xf32>
    %73 = arith.addf %72, %7 : vector<1x256xf32>
    %74 = arith.truncf %73 : vector<1x256xf32> to vector<1x256xbf16>
    %c1 = arith.constant 1 : index
    %c0_32 = arith.constant 0 : index
    %c0_33 = arith.constant 0 : index
    %75 = vector.load %arg5[%c1, %c0_32, %c0_33] : memref<2x256x256xbf16, #tpu.memory_space<vmem>>, vector<1x256x256xbf16>
    %76 = vector.shape_cast %75 : vector<1x256x256xbf16> to vector<256x256xbf16>
    %cst_34 = arith.constant dense<0.000000e+00> : vector<1x256xf32>
    %77 = tpu.matmul %74, %76, %cst_34 {dimension_numbers = #tpu.dot_dimension_numbers<[1], [0], [0], [1], [0, 0, 1, 1], [], []>} : vector<1x256xbf16>, vector<256x256xbf16>, vector<1x256xf32> -> vector<1x256xf32>
    %78 = arith.addf %77, %2 : vector<1x256xf32>
    %cst_35 = arith.constant 5.000000e-01 : f32
    %79 = vector.broadcast %cst_35 : f32 to vector<1x256xf32>
    %80 = arith.mulf %79, %78 : vector<1x256xf32>
    %cst_36 = arith.constant 0.707106769 : f32
    %81 = vector.broadcast %cst_36 : f32 to vector<1x256xf32>
    %82 = arith.mulf %78, %81 : vector<1x256xf32>
    %83 = math.erf %82 : vector<1x256xf32>
    %cst_37 = arith.constant 1.000000e+00 : f32
    %84 = vector.broadcast %cst_37 : f32 to vector<1x256xf32>
    %85 = arith.addf %84, %83 : vector<1x256xf32>
    %86 = arith.mulf %80, %85 : vector<1x256xf32>
    %cst_38 = arith.constant dense<0.000000e+00> : vector<1xf32>
    %87 = vector.multi_reduction <add>, %86, %cst_38 [1] : vector<1x256xf32> to vector<1xf32>
    %88 = vector.shape_cast %87 : vector<1xf32> to vector<1x1xf32>
    %cst_39 = arith.constant 2.560000e+02 : f32
    %89 = vector.broadcast %cst_39 : f32 to vector<1x1xf32>
    %90 = arith.divf %88, %89 : vector<1x1xf32>
    %91 = vector.broadcast %90 : vector<1x1xf32> to vector<1x256xf32>
    %92 = arith.subf %86, %91 : vector<1x256xf32>
    %93 = arith.mulf %92, %92 : vector<1x256xf32>
    %cst_40 = arith.constant dense<0.000000e+00> : vector<1xf32>
    %94 = vector.multi_reduction <add>, %93, %cst_40 [1] : vector<1x256xf32> to vector<1xf32>
    %95 = vector.shape_cast %94 : vector<1xf32> to vector<1x1xf32>
    %cst_41 = arith.constant 2.560000e+02 : f32
    %96 = vector.broadcast %cst_41 : f32 to vector<1x1xf32>
    %97 = arith.divf %95, %96 : vector<1x1xf32>
    %98 = vector.broadcast %90 : vector<1x1xf32> to vector<1x256xf32>
    %99 = arith.subf %86, %98 : vector<1x256xf32>
    %cst_42 = arith.constant 9.99999974E-6 : f32
    %100 = vector.broadcast %cst_42 : f32 to vector<1x1xf32>
    %101 = arith.addf %97, %100 : vector<1x1xf32>
    %102 = math.rsqrt %101 : vector<1x1xf32>
    %103 = vector.broadcast %102 : vector<1x1xf32> to vector<1x256xf32>
    %104 = arith.mulf %99, %103 : vector<1x256xf32>
    %cst_43 = arith.constant 1.000000e+00 : f32
    %105 = vector.broadcast %cst_43 : f32 to vector<1x256xf32>
    %106 = arith.addf %105, %6 : vector<1x256xf32>
    %107 = arith.mulf %104, %106 : vector<1x256xf32>
    %108 = arith.addf %107, %7 : vector<1x256xf32>
    %c0_44 = arith.constant 0 : index
    %c0_45 = arith.constant 0 : index
    %109 = vector.load %arg7[%c0_44, %c0_45] : memref<1x256xf32, #tpu.memory_space<vmem>>, vector<1x256xf32>
    tpu.vector_store %arg7[%c0_44, %c0_45], %108 {strides = array<i32>} : memref<1x256xf32, #tpu.memory_space<vmem>>, vector<1x256xf32>,
    return
  }
}

</mosaic_0001>

<bundles_post_ra>
// kernel: mylinear_forward.1
= control target key start
LH: loop header
LB: loop body
LE: loop exit
PB: predicated region body
PF: predicated region fallthrough
CT: control target
= control target key end

     0   :  { %13 = vsyncpa [#allocation4], 0  ;;  %s1702_s0 = inlined_call_operand.<no memory space> [shape: s32[1], index: 0, kind: input, shape index: {}]   ;;  %s1703_s1 = inlined_call_operand.vmem [shape: f32[1,128], index: 1, kind: input, shape index: {}]   ;;  %s1704_s2 = inlined_call_operand.vmem [shape: f32[16,512], index: 2, kind: input, shape index: {}]   ;;  %s1705_s3 = inlined_call_operand.vmem [shape: f32[256,64], index: 3, kind: input, shape index: {}]   ;;  %s1706_s4 = inlined_call_operand.vmem [shape: bf16[128,256], index: 4, kind: input, shape index: {}]   ;;  %s1707_s5 = inlined_call_operand.hbm [shape: bf16[2,256,256], index: 5, kind: input, shape index: {}]   ;;  %s1708_s6 = inlined_call_operand.vmem [shape: f32[1,768], index: 6, kind: input, shape index: {}]   ;;  %s1709_s7 = inlined_call_operand.hbm [shape: f32[1,256], index: 7, kind: output, shape index: {}]  }
   0x1   :  { %14 = vsyncpa [#allocation5], 0  ;;  %s1397_s24 = smov [#allocation3]  }
   0x2   :  { %s30_s25 = sshll.u32 %s1397_s24, 4  ;;  %s31_s25 = int_to_ptr.vmem [resolvable:$true] %s30_s25 }
   0x3   :  { %s1361_s26 = scalar_lea.vmem %s31_s25, 8192  ;;  %p1366_p1 = scmp.lt.s32.totalorder %s31_s25, %s31_s25 }
   0x4   :  { %p1362_p0 = scmp.ne.s32.totalorder %s31_s25, %s1361_s26  ;;  %p1367_p2 = scmp.lt.s32.totalorder %s1361_s26, %s1361_s26 }
   0x6   :  { %p1368_p3 = por %p1367_p2, %p1366_p1 }
   0x8   :  { %p1369_p4 = pnand %p1368_p3, %p1362_p0 }
   0xa   :  { %1372 = shalt.err (!%p1369_p4)
}
   0xb   :  { %s1398_s27 = smov 128   ;;  %s1399_s28 = smov 8  }
   0xc   :  { %36 = dma.hbm_to_vmem [thread:$0]  %s1707_s5, 8192, %s31_s25, [#allocation4], %s1398_s27, %s1398_s27, %s1399_s28  }
   0xd   :  { %1393 = dma.done.wait [#allocation4], 8192  }
   0xe   :  { %1394 = vsyncadd [#allocation4], 4294959104  ;;  %v1400_v0 = vmov 0   ;;  %v1219_v1 = vld [vmem:[%s1706_s4 + $0x74] ss:$8 sps:$4 sm:$0xff]   ;;  %vm287_vm0 = vcmask 523264   ;;  %v155_v52 = vlaneseq }
   0xf   :  { %197 = vmatprep.mubr.bf16.mxu0 %v1400_v0  ;;  %v1221_v2 = vld [vmem:[%s1706_s4 + $0x70] ss:$8 sps:$4 sm:$0xff]   ;;  %165 = vmatprep.subr.bf16.mxu0 %v1219_v1  ;;  %v1222_v3 = vld [vmem:[%s1706_s4 + $0x64] ss:$8 sps:$4 sm:$0xff]   ;;  %v1224_v4 = vld [vmem:[%s1706_s4 + $0x60] ss:$8 sps:$4 sm:$0xff]  }
  0x10   :  { %166 = vmatpush1.bf16.msra.mxu0 %v1221_v2  ;;  %v1225_v5 = vld [vmem:[%s1706_s4 + $0x54] ss:$8 sps:$4 sm:$0xff]   ;;  %v1227_v6 = vld [vmem:[%s1706_s4 + $0x50] ss:$8 sps:$4 sm:$0xff]   ;;  %v1228_v7 = vld [vmem:[%s1706_s4 + $0x44] ss:$8 sps:$4 sm:$0xff]  }
  0x11   :  { %167 = vmatprep.subr.bf16.mxu0 %v1222_v3  ;;  %v1230_v8 = vld [vmem:[%s1706_s4 + $0x40] ss:$8 sps:$4 sm:$0xff]   ;;  %v1231_v9 = vld [vmem:[%s1706_s4 + $0x34] ss:$8 sps:$4 sm:$0xff]   ;;  %v1233_v10 = vld [vmem:[%s1706_s4 + $0x30] ss:$8 sps:$4 sm:$0xff]  }
  0x12   :  { %v1234_v11 = vld [vmem:[%s1706_s4 + $0x24] ss:$8 sps:$4 sm:$0xff]   ;;  %v1236_v12 = vld [vmem:[%s1706_s4 + $0x20] ss:$8 sps:$4 sm:$0xff]   ;;  %v1237_v13 = vld [vmem:[%s1706_s4 + $0x14] ss:$8 sps:$4 sm:$0xff]  }
  0x13   :  { %v1239_v14 = vld [vmem:[%s1706_s4 + $0x10] ss:$8 sps:$4 sm:$0xff]   ;;  %v1240_v15 = vld [vmem:[%s1706_s4 + $0x4] ss:$8 sps:$4 sm:$0xff]   ;;  %v1242_v16 = vld [vmem:[%s1706_s4] ss:$8 sps:$4 sm:$0xff]  }
  0x14   :  { %168 = vmatpush1.bf16.msra.mxu0 %v1224_v4  ;;  %v56_v17 = vld [vmem:[%s1703_s1] sm:$0x1]  ;;  %v286_v19 = vld [vmem:[%s1705_s3 + $0xf8] sm:$0xff]  ;;  %v285_v21 = vld [vmem:[%s1705_s3 + $0xf0] sm:$0xff]  ;;  %v1401_v22 = vmov 0.015625   ;;  %v1629_v53 = vshrl.u32 %v155_v52, 7 }
  0x15   :  { %169 = vmatprep.subr.bf16.mxu0 %v1225_v5  ;;  %v57_v18 = vpack.c.bf16 %v56_v17, %v56_v17  ;;  %v270_v20 = vld [vmem:[%s1705_s3 + $0x78] sm:$0xff]  ;;  %1178 = vmatprep.subr.msk.mxu1 %vm287_vm0, %v286_v19  ;;  %v269_v23 = vld [vmem:[%s1705_s3 + $0x70] sm:$0xff]  ;;  %v284_v24 = vld [vmem:[%s1705_s3 + $0xe8] sm:$0xff]  ;;  %vm206_vm1 = vcmask 1040384   ;;  %s47_s30 = sshra.s32 %s1702_s0, 3  ;;  %s50_s10 = sand.u32 7, %s1702_s0 }
  0x16   :  { %1210 = vmatprep.mubr.msk.f32.mxu1 %vm287_vm0, %v1401_v22  ;;  %1179 = vmatpush3.xpose.msk.msra.mxu1 %vm287_vm0, %v270_v20  ;;  %v268_v25 = vld [vmem:[%s1705_s3 + $0x68] sm:$0xff]  ;;  %v283_v26 = vld [vmem:[%s1705_s3 + $0xe0] sm:$0xff]  ;;  %v282_v28 = vld [vmem:[%s1705_s3 + $0xd8] sm:$0xff]  ;;  %v1632_v54 = vsub.s32 0, %v1629_v53  ;;  %v1638_v56 = vsub.s32 1, %v1629_v53  ;;  %s1177_s11 = sshll.u32 %s47_s30, 5 }
  0x17   :  { %1180 = vmatprep.subr.msk.mxu1 %vm287_vm0, %v285_v21  ;;  %v267_v27 = vld [vmem:[%s1705_s3 + $0x60] sm:$0xff]  ;;  %v266_v29 = vld [vmem:[%s1705_s3 + $0x58] sm:$0xff]  ;;  %v281_v30 = vld [vmem:[%s1705_s3 + $0xd0] sm:$0xff]  ;;  %s53_s12 = sadd.s32 %s1177_s11, %s50_s10  ;;  %vm1041_vm2 = vcmp.lt.s32.totalorder %v155_v52, 256 }
  0x18   :  { %170 = vmatpush1.bf16.msra.mxu0 %v1227_v6  ;;  %v265_v31 = vld [vmem:[%s1705_s3 + $0x50] sm:$0xff]  ;;  %v280_v32 = vld [vmem:[%s1705_s3 + $0xc8] sm:$0xff]  ;;  %v279_v34 = vld [vmem:[%s1705_s3 + $0xc0] sm:$0xff]  ;;  %s54_s5 = scalar_lea.vmem %s1704_s2, %s53_s12 }
  0x19   :  { %171 = vmatprep.subr.bf16.mxu0 %v1228_v7  ;;  %v264_v33 = vld [vmem:[%s1705_s3 + $0x48] sm:$0xff]  ;;  %v263_v35 = vld [vmem:[%s1705_s3 + $0x40] sm:$0xff]  ;;  %v278_v36 = vld [vmem:[%s1705_s3 + $0xb8] sm:$0xff] }
  0x1a   :  { %1181 = vmatpush3.xpose.msk.msra.mxu1 %vm287_vm0, %v269_v23  ;;  %v262_v37 = vld [vmem:[%s1705_s3 + $0x38] sm:$0xff]  ;;  %v277_v38 = vld [vmem:[%s1705_s3 + $0xb0] sm:$0xff]  ;;  %v276_v40 = vld [vmem:[%s1705_s3 + $0xa8] sm:$0xff] }
  0x1b   :  { %1182 = vmatprep.subr.msk.mxu1 %vm287_vm0, %v284_v24  ;;  %v261_v39 = vld [vmem:[%s1705_s3 + $0x30] sm:$0xff]  ;;  %v260_v41 = vld [vmem:[%s1705_s3 + $0x28] sm:$0xff]  ;;  %v275_v42 = vld [vmem:[%s1705_s3 + $0xa0] sm:$0xff] }
  0x1c   :  { %172 = vmatpush1.bf16.msra.mxu0 %v1230_v8  ;;  %v259_v43 = vld [vmem:[%s1705_s3 + $0x20] sm:$0xff]  ;;  %v274_v44 = vld [vmem:[%s1705_s3 + $0x98] sm:$0xff]  ;;  %v273_v46 = vld [vmem:[%s1705_s3 + $0x90] sm:$0xff] }
  0x1d   :  { %173 = vmatprep.subr.bf16.mxu0 %v1231_v9  ;;  %v258_v45 = vld [vmem:[%s1705_s3 + $0x18] sm:$0xff]  ;;  %v257_v47 = vld [vmem:[%s1705_s3 + $0x10] sm:$0xff]  ;;  %v272_v48 = vld [vmem:[%s1705_s3 + $0x88] sm:$0xff] }
  0x1e   :  { %1183 = vmatpush3.xpose.msk.msra.mxu1 %vm287_vm0, %v268_v25  ;;  %v256_v49 = vld [vmem:[%s1705_s3 + $0x8] sm:$0xff]  ;;  %v271_v50 = vld [vmem:[%s1705_s3 + $0x80] sm:$0xff]  ;;  %v1243_v4 = vld [vmem:[#allocation3 + $0x70] ss:$8 sps:$4 sm:$0xff]  }
  0x1f   :  { %1184 = vmatprep.subr.msk.mxu1 %vm287_vm0, %v283_v26  ;;  %v255_v51 = vld [vmem:[%s1705_s3] sm:$0xff]  ;;  %v1245_v5 = vld [vmem:[#allocation3 + $0x74] ss:$8 sps:$4 sm:$0xff]   ;;  %v1249_v9 = vld [vmem:[#allocation3 + $0x50] ss:$8 sps:$4 sm:$0xff]  }
  0x20   :  { %174 = vmatpush1.bf16.msra.mxu0 %v1233_v10  ;;  %v43_v55 = vld [vmem:[%s1708_s6] sm:$0x3]  ;;  %v1248_v6 = vld [vmem:[#allocation3 + $0x64] ss:$8 sps:$4 sm:$0xff]   ;;  %v1251_v8 = vld [vmem:[#allocation3 + $0x54] ss:$8 sps:$4 sm:$0xff]  }
  0x21   :  { %175 = vmatprep.subr.bf16.mxu0 %v1234_v11  ;;  %v158_v57 = vrot.slane %v43_v55, %v1632_v54  ;;  %v162_v58 = vrot.slane %v43_v55, %v1638_v56  ;;  %v1246_v7 = vld [vmem:[#allocation3 + $0x60] ss:$8 sps:$4 sm:$0xff]   ;;  %v1254_v10 = vld [vmem:[#allocation3 + $0x44] ss:$8 sps:$4 sm:$0xff]   ;;  %v1261_v17 = vld [vmem:[#allocation3 + $0x10] ss:$8 sps:$4 sm:$0xff]  }
  0x22   :  { %1185 = vmatpush3.xpose.msk.msra.mxu1 %vm287_vm0, %v267_v27  ;;  %v1252_v11 = vld [vmem:[#allocation3 + $0x40] ss:$8 sps:$4 sm:$0xff]   ;;  %v1269_v20 = vld [vmem:[#allocation3 + $0xf4] ss:$8 sps:$4 sm:$0xff]   ;;  %v1267_v21 = vld [vmem:[#allocation3 + $0xf0] ss:$8 sps:$4 sm:$0xff]  }
  0x23   :  { %1186 = vmatprep.subr.msk.mxu1 %vm287_vm0, %v282_v28  ;;  %v1264_v19 = vld [vmem:[#allocation3] ss:$8 sps:$4 sm:$0xff]  }
  0x24   :  { %176 = vmatpush1.bf16.msra.mxu0 %v1236_v12  ;;  %v1257_v12 = vld [vmem:[#allocation3 + $0x34] ss:$8 sps:$4 sm:$0xff]  }
  0x25   :  { %177 = vmatprep.subr.bf16.mxu0 %v1237_v13  ;;  %v1255_v13 = vld [vmem:[#allocation3 + $0x30] ss:$8 sps:$4 sm:$0xff]  }
  0x26   :  { %1187 = vmatpush3.xpose.msk.msra.mxu1 %vm287_vm0, %v266_v29 }
  0x27   :  { %1188 = vmatprep.subr.msk.mxu1 %vm287_vm0, %v281_v30 }
  0x28   :  { %178 = vmatpush1.bf16.msra.mxu0 %v1239_v14  ;;  %v1260_v14 = vld [vmem:[#allocation3 + $0x24] ss:$8 sps:$4 sm:$0xff]  }
  0x29   :  { %179 = vmatprep.subr.bf16.mxu0 %v1240_v15  ;;  %v1258_v15 = vld [vmem:[#allocation3 + $0x20] ss:$8 sps:$4 sm:$0xff]  }
  0x2a   :  { %1189 = vmatpush3.xpose.msk.msra.mxu1 %vm287_vm0, %v265_v31  ;;  %v1272_v31 = vld [vmem:[#allocation3 + $0xe4] ss:$8 sps:$4 sm:$0xff]  }
  0x2b   :  { %1190 = vmatprep.subr.msk.mxu1 %vm287_vm0, %v280_v32  ;;  %v1270_v32 = vld [vmem:[#allocation3 + $0xe0] ss:$8 sps:$4 sm:$0xff]  }
  0x2c   :  { %180 = vmatpush1.bf16.msra.mxu0 %v1242_v16  ;;  %v1263_v16 = vld [vmem:[#allocation3 + $0x14] ss:$8 sps:$4 sm:$0xff]  }
  0x2d   :  { %665 = vmatprep.subr.bf16.mxu0 %v1245_v5 }
  0x2e   :  { %1191 = vmatpush3.xpose.msk.msra.mxu1 %vm287_vm0, %v264_v33  ;;  %v1275_v33 = vld [vmem:[#allocation3 + $0xd4] ss:$8 sps:$4 sm:$0xff]  }
  0x2f   :  { %198 = vmatmul.mubr.bf16.vlgmr.msra.gmra.mxu0 %v57_v18  ;;  %1192 = vmatprep.subr.msk.mxu1 %vm287_vm0, %v279_v34  ;;  %v1266_v18 = vld [vmem:[#allocation3 + $0x4] ss:$8 sps:$4 sm:$0xff]   ;;  %v1273_v34 = vld [vmem:[#allocation3 + $0xd0] ss:$8 sps:$4 sm:$0xff]  }
  0x30   :  { %666 = vmatpush1.bf16.msra.mxu0 %v1243_v4 }
  0x31   :  { %667 = vmatprep.subr.bf16.mxu0 %v1248_v6 }
  0x32   :  { %1193 = vmatpush3.xpose.msk.msra.mxu1 %vm287_vm0, %v263_v35  ;;  %v1278_v35 = vld [vmem:[#allocation3 + $0xc4] ss:$8 sps:$4 sm:$0xff]  }
  0x33   :  { %1194 = vmatprep.subr.msk.mxu1 %vm287_vm0, %v278_v36  ;;  %v1276_v36 = vld [vmem:[#allocation3 + $0xc0] ss:$8 sps:$4 sm:$0xff]  }
  0x34   :  { %668 = vmatpush1.bf16.msra.mxu0 %v1246_v7 }
  0x35   :  { %669 = vmatprep.subr.bf16.mxu0 %v1251_v8 }
  0x36   :  { %1195 = vmatpush3.xpose.msk.msra.mxu1 %vm287_vm0, %v262_v37  ;;  %v1281_v37 = vld [vmem:[#allocation3 + $0xb4] ss:$8 sps:$4 sm:$0xff]  }
  0x37   :  { %1196 = vmatprep.subr.msk.mxu1 %vm287_vm0, %v277_v38  ;;  %v1279_v38 = vld [vmem:[#allocation3 + $0xb0] ss:$8 sps:$4 sm:$0xff]  }
  0x38   :  { %670 = vmatpush1.bf16.msra.mxu0 %v1249_v9  ;;  %v44_v9 = vld [vmem:[%s1708_s6 + $0x2] sm:$0x3] }
  0x39   :  { %671 = vmatprep.subr.bf16.mxu0 %v1254_v10  ;;  %v658_v10 = vrot.slane %v44_v9, %v1632_v54 }
  0x3a   :  { %1197 = vmatpush3.xpose.msk.msra.mxu1 %vm287_vm0, %v261_v39  ;;  %v1284_v39 = vld [vmem:[#allocation3 + $0xa4] ss:$8 sps:$4 sm:$0xff]  }
  0x3b   :  { %1198 = vmatprep.subr.msk.mxu1 %vm287_vm0, %v276_v40  ;;  %v1282_v40 = vld [vmem:[#allocation3 + $0xa0] ss:$8 sps:$4 sm:$0xff]  }
  0x3c   :  { %672 = vmatpush1.bf16.msra.mxu0 %v1252_v11  ;;  %v662_v11 = vrot.slane %v44_v9, %v1638_v56  ;;  %v1327_v9 = vld [vmem:[#allocation3 + $0x1b0] ss:$8 sps:$4 sm:$0xff]  }
  0x3d   :  { %673 = vmatprep.subr.bf16.mxu0 %v1257_v12 }
  0x3e   :  { %1199 = vmatpush3.xpose.msk.msra.mxu1 %vm287_vm0, %v260_v41  ;;  %v1287_v41 = vld [vmem:[#allocation3 + $0x94] ss:$8 sps:$4 sm:$0xff]  }
  0x3f   :  { %1200 = vmatprep.subr.msk.mxu1 %vm287_vm0, %v275_v42  ;;  %v1285_v42 = vld [vmem:[#allocation3 + $0x90] ss:$8 sps:$4 sm:$0xff]  }
  0x40   :  { %674 = vmatpush1.bf16.msra.mxu0 %v1255_v13 }
  0x41   :  { %675 = vmatprep.subr.bf16.mxu0 %v1260_v14 }
  0x42   :  { %1201 = vmatpush3.xpose.msk.msra.mxu1 %vm287_vm0, %v259_v43  ;;  %v1290_v43 = vld [vmem:[#allocation3 + $0x84] ss:$8 sps:$4 sm:$0xff]  }
  0x43   :  { %1202 = vmatprep.subr.msk.mxu1 %vm287_vm0, %v274_v44  ;;  %v1288_v44 = vld [vmem:[#allocation3 + $0x80] ss:$8 sps:$4 sm:$0xff]  }
  0x44   :  { %676 = vmatpush1.bf16.msra.mxu0 %v1258_v15 }
  0x45   :  { %677 = vmatprep.subr.bf16.mxu0 %v1263_v16 }
  0x46   :  { %1203 = vmatpush3.xpose.msk.msra.mxu1 %vm287_vm0, %v258_v45 }
  0x47   :  { %1204 = vmatprep.subr.msk.mxu1 %vm287_vm0, %v273_v46 }
  0x48   :  { %678 = vmatpush1.bf16.msra.mxu0 %v1261_v17 }
  0x49   :  { %679 = vmatprep.subr.bf16.mxu0 %v1266_v18 }
  0x4a   :  { %1205 = vmatpush3.xpose.msk.msra.mxu1 %vm287_vm0, %v257_v47 }
  0x4b   :  { %1206 = vmatprep.subr.msk.mxu1 %vm287_vm0, %v272_v48  ;;  %v55_v48 = vld [vmem:[%s54_s5] ss:$8 sm:$0xf] }
  0x4c   :  { %680 = vmatpush1.bf16.msra.mxu0 %v1264_v19 }
  0x4d   :  { %681 = vmatprep.subr.bf16.mxu0 %v1269_v20 }
  0x4e   :  { %1207 = vmatpush3.xpose.msk.msra.mxu1 %vm287_vm0, %v256_v49  ;;  %v228_v49 = vadd.f32 1.0, %v55_v48 }
  0x4f   :  { %1208 = vmatprep.subr.msk.mxu1 %vm287_vm0, %v271_v50  ;;  %v245_v50 = vsub.s32 2, %v1629_v53 }
  0x50   :  { %682 = vmatpush2.bf16.msra.mxu0 %v1267_v21  ;;  %v1658_v55 = vrot.slane %v228_v49, %v1632_v54 }
  0x51   :  { %683 = vmatprep.subr.bf16.mxu0 %v1272_v31  ;;  %v1291_v31 = vld [vmem:[#allocation3 + $0x170] ss:$8 sps:$4 sm:$0xff]  }
  0x52   :  { %1209 = vmatpush3.xpose.msk.msra.mxu1 %vm287_vm0, %v255_v51  ;;  %v249_v51 = vsub.s32 3, %v1629_v53 }
  0x54   :  { %684 = vmatpush2.bf16.msra.mxu0 %v1270_v32  ;;  %v1293_v32 = vld [vmem:[#allocation3 + $0x174] ss:$8 sps:$4 sm:$0xff]  }
  0x55   :  { %1211 = vmatmul.mubr.msk.f32.vlgmr.msra.gmra.mxu1 %vm287_vm0, %v1401_v22  ;;  %685 = vmatprep.subr.bf16.mxu0 %v1275_v33  ;;  %v1296_v33 = vld [vmem:[#allocation3 + $0x164] ss:$8 sps:$4 sm:$0xff]  }
  0x56   :  { %946 = vmatprep.subr.bf16.mxu1 %v1293_v32 }
  0x57   :  { %947 = vmatpush1.bf16.msra.mxu1 %v1291_v31 }
  0x58   :  { %686 = vmatpush2.bf16.msra.mxu0 %v1273_v34  ;;  %v1294_v34 = vld [vmem:[#allocation3 + $0x160] ss:$8 sps:$4 sm:$0xff]   ;;  %948 = vmatprep.subr.bf16.mxu1 %v1296_v33 }
  0x59   :  { %687 = vmatprep.subr.bf16.mxu0 %v1278_v35  ;;  %v1299_v35 = vld [vmem:[#allocation3 + $0x154] ss:$8 sps:$4 sm:$0xff]  }
  0x5b   :  { %949 = vmatpush1.bf16.msra.mxu1 %v1294_v34 }
  0x5c   :  { %688 = vmatpush2.bf16.msra.mxu0 %v1276_v36  ;;  %v1297_v36 = vld [vmem:[#allocation3 + $0x150] ss:$8 sps:$4 sm:$0xff]   ;;  %950 = vmatprep.subr.bf16.mxu1 %v1299_v35 }
  0x5d   :  { %689 = vmatprep.subr.bf16.mxu0 %v1281_v37  ;;  %v1302_v37 = vld [vmem:[#allocation3 + $0x144] ss:$8 sps:$4 sm:$0xff]  }
  0x5f   :  { %951 = vmatpush1.bf16.msra.mxu1 %v1297_v36 }
  0x60   :  { %690 = vmatpush2.bf16.msra.mxu0 %v1279_v38  ;;  %v1300_v38 = vld [vmem:[#allocation3 + $0x140] ss:$8 sps:$4 sm:$0xff]   ;;  %952 = vmatprep.subr.bf16.mxu1 %v1302_v37 }
  0x61   :  { %691 = vmatprep.subr.bf16.mxu0 %v1284_v39  ;;  %v1305_v39 = vld [vmem:[#allocation3 + $0x134] ss:$8 sps:$4 sm:$0xff]  }
  0x63   :  { %953 = vmatpush1.bf16.msra.mxu1 %v1300_v38 }
  0x64   :  { %692 = vmatpush2.bf16.msra.mxu0 %v1282_v40  ;;  %v1303_v40 = vld [vmem:[#allocation3 + $0x130] ss:$8 sps:$4 sm:$0xff]   ;;  %954 = vmatprep.subr.bf16.mxu1 %v1305_v39 }
  0x65   :  { %693 = vmatprep.subr.bf16.mxu0 %v1287_v41  ;;  %v1308_v41 = vld [vmem:[#allocation3 + $0x124] ss:$8 sps:$4 sm:$0xff]  }
  0x67   :  { %955 = vmatpush1.bf16.msra.mxu1 %v1303_v40 }
  0x68   :  { %694 = vmatpush2.bf16.msra.mxu0 %v1285_v42  ;;  %v1306_v42 = vld [vmem:[#allocation3 + $0x120] ss:$8 sps:$4 sm:$0xff]   ;;  %956 = vmatprep.subr.bf16.mxu1 %v1308_v41 }
  0x69   :  { %695 = vmatprep.subr.bf16.mxu0 %v1290_v43  ;;  %v1311_v43 = vld [vmem:[#allocation3 + $0x114] ss:$8 sps:$4 sm:$0xff]  }
  0x6b   :  { %957 = vmatpush1.bf16.msra.mxu1 %v1306_v42 }
  0x6c   :  { %696 = vmatpush2.bf16.msra.mxu0 %v1288_v44  ;;  %v1309_v44 = vld [vmem:[#allocation3 + $0x110] ss:$8 sps:$4 sm:$0xff]   ;;  %958 = vmatprep.subr.bf16.mxu1 %v1311_v43 }
  0x6f   :  { %959 = vmatpush1.bf16.msra.mxu1 %v1309_v44 }
  0xef   :  { %v199_v59 = vpop.f32.mrf.mxu0 }
  0xf0   :  { %v200_v60 = vadd.f32 %v199_v59, %v158_v57  ;;  %v1661_v57 = vrot.slane %v228_v49, %v1638_v56  ;;  %v1320_v49 = vld [vmem:[#allocation3 + $0x1e4] ss:$8 sps:$4 sm:$0xff]  }
  0xf1   :  { %v201_v61 = vpop.f32.mrf.mxu0 }
  0xf2   :  { %v202_v62 = vadd.f32 %v201_v61, %v162_v58  ;;  %v207_v0 = vsel %vm206_vm1, %v200_v60, 0.0 }
  0xf3   :  { %v203_v63 = vpop.f32.mrf.mxu0 }
  0xf4   :  { %v208_v1 = vsel %vm206_vm1, %v202_v62, 0.0 }
  0xf5   :  { %v204_v2 = vpop.f32.mrf.mxu0  ;;  %v209_v3 = vadd.f32 %v208_v1, %v207_v0 }
  0xf7   :  { %210 = vadd.xlane.f32.xlu0 %v209_v3 }
 0x115   :  { %v453_v63 = vpop.f32.mrf.mxu1 }
 0x117   :  { %v455_v4 = vpop.f32.mrf.mxu1 }
 0x180   :  { %v211_v22 = vpop.xlane.xlu0 %210 }
 0x181   :  { %v213_v23 = vmul.f32 0.00390625, %v211_v22 }
 0x183   :  { %v214_v24 = vsub.f32 %v200_v60, %v213_v23  ;;  %v215_v25 = vsub.f32 %v202_v62, %v213_v23  ;;  %v1663_v60 = vrot.slane %v55_v48, %v245_v50  ;;  %v1665_v62 = vrot.slane %v55_v48, %v249_v51  ;;  %v1315_v48 = vld [vmem:[#allocation3 + $0x1f0] ss:$8 sps:$4 sm:$0xff]   ;;  %v1318_v50 = vld [vmem:[#allocation3 + $0x1e0] ss:$8 sps:$4 sm:$0xff]  }
 0x185   :  { %v216_v26 = vmul.f32 %v214_v24, %v214_v24  ;;  %v217_v27 = vmul.f32 %v215_v25, %v215_v25 }
 0x187   :  { %v218_v28 = vsel %vm206_vm1, %v216_v26, 0.0  ;;  %v219_v29 = vsel %vm206_vm1, %v217_v27, 0.0 }
 0x188   :  { %v220_v30 = vadd.f32 %v219_v29, %v218_v28 }
 0x18a   :  { %221 = vadd.xlane.f32.xlu0 %v220_v30 }
 0x213   :  { %v222_v45 = vpop.xlane.xlu0 %221 }
 0x214   :  { %v223_v46 = vmul.f32 0.00390625, %v222_v45  ;;  %v1314_v45 = vld [vmem:[#allocation3 + $0x104] ss:$8 sps:$4 sm:$0xff]  }
 0x215   :  { %960 = vmatprep.subr.bf16.mxu1 %v1314_v45 }
 0x216   :  { %v224_v47 = vadd.f32 1e-05, %v223_v46  ;;  %v1312_v46 = vld [vmem:[#allocation3 + $0x100] ss:$8 sps:$4 sm:$0xff]  }
 0x217   :  { %961 = vmatpush1.bf16.msra.mxu1 %v1312_v46 }
 0x218   :  { %1339 = vrsqrt.f32 %v224_v47  ;;  %v1317_v47 = vld [vmem:[#allocation3 + $0x1f4] ss:$8 sps:$4 sm:$0xff]  }
 0x219   :  { %962 = vmatprep.subr.bf16.mxu1 %v1317_v47 }
 0x21b   :  { %963 = vmatpush2.bf16.msra.mxu1 %v1315_v48 }
 0x21c   :  { %964 = vmatprep.subr.bf16.mxu1 %v1320_v49 }
 0x21f   :  { %965 = vmatpush2.bf16.msra.mxu1 %v1318_v50 }
 0x225   :  { %v1340_v58 = vpop.eup %1339 }
 0x226   :  { %v226_v59 = vmul.f32 %v1340_v58, %v214_v24  ;;  %v227_v61 = vmul.f32 %v1340_v58, %v215_v25 }
 0x228   :  { %v240_v0 = vmul.f32 %v1658_v55, %v226_v59  ;;  %v241_v1 = vmul.f32 %v1661_v57, %v227_v61 }
 0x22a   :  { %v253_v2 = vadd.f32 %v1663_v60, %v240_v0  ;;  %v254_v3 = vadd.f32 %v1665_v62, %v241_v1 }
 0x22c   :  { %v458_v5 = vadd.f32 %v453_v63, %v253_v2  ;;  %v459_v6 = vadd.f32 %v455_v4, %v254_v3  ;;  %v1323_v4 = vld [vmem:[#allocation3 + $0x1d4] ss:$8 sps:$4 sm:$0xff]  }
 0x22d   :  { %966 = vmatprep.subr.bf16.mxu1 %v1323_v4  ;;  %v1402_v4 = vmov 1966171168  }
 0x22e   :  { %v460_v7 = vpack.c.bf16 %v458_v5, %v458_v5  ;;  %v461_v8 = vpack.c.bf16 %v459_v6, %v459_v6  ;;  %v1321_v5 = vld [vmem:[#allocation3 + $0x1d0] ss:$8 sps:$4 sm:$0xff]   ;;  %v1324_v6 = vld [vmem:[#allocation3 + $0x1c0] ss:$8 sps:$4 sm:$0xff]  }
 0x22f   :  { %967 = vmatpush2.bf16.msra.mxu1 %v1321_v5  ;;  %v1025_v5 = vunpack.c.l.s4 %v1402_v4 }
 0x230   :  { %697 = vmatprep.mubr.bf16.mxu0 %v461_v8  ;;  %v1329_v8 = vld [vmem:[#allocation3 + $0x1b4] ss:$8 sps:$4 sm:$0xff]  }
 0x231   :  { %698 = vmatmul.mubr.bf16.vlgmr.msra.gmra.mxu0 %v460_v7  ;;  %v1326_v7 = vld [vmem:[#allocation3 + $0x1c4] ss:$8 sps:$4 sm:$0xff]  }
 0x232   :  { %968 = vmatprep.subr.bf16.mxu1 %v1326_v7 }
 0x233   :  { %969 = vmatpush2.bf16.msra.mxu1 %v1324_v6 }
 0x234   :  { %970 = vmatprep.subr.bf16.mxu1 %v1329_v8 }
 0x237   :  { %971 = vmatpush2.bf16.msra.mxu1 %v1327_v9  ;;  %v1026_v9 = vunpack.c.0.s8 %v1025_v5 }
 0x2f1   :  { %v699_v12 = vpop.f32.mrf.mxu0 }
 0x2f2   :  { %v700_v13 = vadd.f32 %v699_v12, %v658_v10  ;;  %v1332_v10 = vld [vmem:[#allocation3 + $0x1a4] ss:$8 sps:$4 sm:$0xff]   ;;  %v1335_v12 = vld [vmem:[#allocation3 + $0x194] ss:$8 sps:$4 sm:$0xff]  }
 0x2f3   :  { %v701_v14 = vpop.f32.mrf.mxu0  ;;  %972 = vmatprep.subr.bf16.mxu1 %v1332_v10 }
 0x2f4   :  { %v708_v15 = vmul.f32 0.70710677, %v700_v13  ;;  %v702_v16 = vadd.f32 %v701_v14, %v662_v11  ;;  %v706_v21 = vmul.f32 0.5, %v700_v13  ;;  %v1330_v11 = vld [vmem:[#allocation3 + $0x1a0] ss:$8 sps:$4 sm:$0xff]  }
 0x2f5   :  { %v703_v17 = vpop.f32.mrf.mxu0  ;;  %973 = vmatpush2.bf16.msra.mxu1 %v1330_v11  ;;  %v1333_v13 = vld [vmem:[#allocation3 + $0x190] ss:$8 sps:$4 sm:$0xff]   ;;  %v1338_v14 = vld [vmem:[#allocation3 + $0x184] ss:$8 sps:$4 sm:$0xff]  }
 0x2f6   :  { %1341 = verf.f32 %v708_v15  ;;  %v709_v18 = vmul.f32 0.70710677, %v702_v16  ;;  %v707_v24 = vmul.f32 0.5, %v702_v16  ;;  %974 = vmatprep.subr.bf16.mxu1 %v1335_v12  ;;  %v1336_v15 = vld [vmem:[#allocation3 + $0x180] ss:$8 sps:$4 sm:$0xff]  }
 0x2f7   :  { %v704_v19 = vpop.f32.mrf.mxu0 }
 0x2f8   :  { %1343 = verf.f32 %v709_v18 }
 0x2f9   :  { %975 = vmatpush2.bf16.msra.mxu1 %v1333_v13 }
 0x2fa   :  { %976 = vmatprep.subr.bf16.mxu1 %v1338_v14  ;;  %v1029_v14 = vsub.s32 %v1026_v9, %v1629_v53 }
 0x2fd   :  { %977 = vmatpush2.bf16.msra.mxu1 %v1336_v15 }
 0x303   :  { %v1342_v20 = vpop.eup %1341 }
 0x304   :  { %v712_v22 = vadd.f32 1.0, %v1342_v20 }
 0x305   :  { %v1344_v23 = vpop.eup %1343 }
 0x306   :  { %v713_v25 = vadd.f32 1.0, %v1344_v23  ;;  %v714_v26 = vmul.f32 %v712_v22, %v706_v21 }
 0x308   :  { %v715_v27 = vmul.f32 %v713_v25, %v707_v24  ;;  %v716_v28 = vsel %vm206_vm1, %v714_v26, 0.0 }
 0x30a   :  { %v717_v29 = vsel %vm206_vm1, %v715_v27, 0.0 }
 0x30b   :  { %v718_v30 = vadd.f32 %v717_v29, %v716_v28  ;;  %v45_v28 = vld [vmem:[%s1708_s6 + $0x4] sm:$0x3]  ;;  %s1403_s6 = smov [#allocation6]  }
 0x30c   :  { %v939_v29 = vrot.slane %v45_v28, %v1632_v54  ;;  %s1050_s17 = sshll.u32 %s1403_s6, 4  ;;  %s1051_s17 = int_to_ptr.vmem [resolvable:$true] %s1050_s17 }
 0x30d   :  { %719 = vadd.xlane.f32.xlu1 %v718_v30  ;;  %v943_v30 = vrot.slane %v45_v28, %v1638_v56  ;;  %s1373_s18 = scalar_lea.vmem %s1051_s17, 32  ;;  %p1378_p6 = scmp.lt.s32.totalorder %s1051_s17, %s1051_s17 }
 0x30e   :  { %p1374_p5 = scmp.ne.s32.totalorder %s1051_s17, %s1373_s18  ;;  %p1379_p7 = scmp.lt.s32.totalorder %s1373_s18, %s1373_s18 }
 0x310   :  { %p1380_p8 = por %p1379_p7, %p1378_p6 }
 0x312   :  { %p1381_p9 = pnand %p1380_p8, %p1374_p5 }
 0x396   :  { %v720_v51 = vpop.xlane.xlu1 %719 }
 0x397   :  { %v721_v58 = vmul.f32 0.00390625, %v720_v51 }
 0x399   :  { %v722_v59 = vsub.f32 %v714_v26, %v721_v58  ;;  %v723_v61 = vsub.f32 %v715_v27, %v721_v58 }
 0x39b   :  { %v724_v63 = vmul.f32 %v722_v59, %v722_v59  ;;  %v725_v0 = vmul.f32 %v723_v61, %v723_v61 }
 0x39d   :  { %v726_v1 = vsel %vm206_vm1, %v724_v63, 0.0  ;;  %v727_v2 = vsel %vm206_vm1, %v725_v0, 0.0 }
 0x39e   :  { %v728_v3 = vadd.f32 %v727_v2, %v726_v1 }
 0x3a0   :  { %729 = vadd.xlane.f32.xlu1 %v728_v3 }
 0x429   :  { %v730_v16 = vpop.xlane.xlu1 %729 }
 0x42a   :  { %v731_v17 = vmul.f32 0.00390625, %v730_v16 }
 0x42c   :  { %v732_v18 = vadd.f32 1e-05, %v731_v17 }
 0x42e   :  { %1345 = vrsqrt.f32 %v732_v18 }
 0x43b   :  { %v1346_v19 = vpop.eup %1345 }
 0x43c   :  { %v735_v20 = vmul.f32 %v1346_v19, %v723_v61  ;;  %v734_v21 = vmul.f32 %v1346_v19, %v722_v59 }
 0x43e   :  { %v737_v22 = vmul.f32 %v735_v20, %v1661_v57  ;;  %v736_v23 = vmul.f32 %v734_v21, %v1658_v55 }
 0x440   :  { %v739_v24 = vadd.f32 %v737_v22, %v1665_v62  ;;  %v738_v25 = vadd.f32 %v736_v23, %v1663_v60 }
 0x442   :  { %v741_v26 = vpack.c.bf16 %v739_v24, %v739_v24  ;;  %v740_v27 = vpack.c.bf16 %v738_v25, %v738_v25 }
 0x444   :  { %978 = vmatprep.mubr.bf16.mxu1 %v741_v26 }
 0x445   :  { %979 = vmatmul.mubr.bf16.vlgmr.msra.gmra.mxu1 %v740_v27 }
 0x505   :  { %v980_v31 = vpop.f32.mrf.mxu1 }
 0x506   :  { %v981_v32 = vadd.f32 %v980_v31, %v939_v29 }
 0x507   :  { %v982_v33 = vpop.f32.mrf.mxu1 }
 0x508   :  { %v989_v34 = vmul.f32 0.70710677, %v981_v32  ;;  %v983_v35 = vadd.f32 %v982_v33, %v943_v30  ;;  %v987_v40 = vmul.f32 0.5, %v981_v32 }
 0x509   :  { %v984_v36 = vpop.f32.mrf.mxu1 }
 0x50a   :  { %1347 = verf.f32 %v989_v34  ;;  %v990_v37 = vmul.f32 0.70710677, %v983_v35  ;;  %v988_v43 = vmul.f32 0.5, %v983_v35 }
 0x50b   :  { %v985_v38 = vpop.f32.mrf.mxu1 }
 0x50c   :  { %1349 = verf.f32 %v990_v37 }
 0x517   :  { %v1348_v39 = vpop.eup %1347 }
 0x518   :  { %v993_v41 = vadd.f32 1.0, %v1348_v39 }
 0x519   :  { %v1350_v42 = vpop.eup %1349 }
 0x51a   :  { %v994_v44 = vadd.f32 1.0, %v1350_v42  ;;  %v995_v45 = vmul.f32 %v993_v41, %v987_v40 }
 0x51c   :  { %v996_v54 = vmul.f32 %v994_v44, %v988_v43  ;;  %v997_v56 = vsel %vm206_vm1, %v995_v45, 0.0 }
 0x51e   :  { %v998_v46 = vsel %vm206_vm1, %v996_v54, 0.0 }
 0x51f   :  { %v999_v47 = vadd.f32 %v998_v46, %v997_v56 }
 0x521   :  { %1000 = vadd.xlane.f32.xlu0 %v999_v47 }
 0x5aa   :  { %v1001_v48 = vpop.xlane.xlu0 %1000 }
 0x5ab   :  { %v1002_v49 = vmul.f32 0.00390625, %v1001_v48 }
 0x5ad   :  { %v1003_v50 = vsub.f32 %v995_v45, %v1002_v49  ;;  %v1004_v51 = vsub.f32 %v996_v54, %v1002_v49 }
 0x5af   :  { %v1005_v58 = vmul.f32 %v1003_v50, %v1003_v50  ;;  %v1006_v59 = vmul.f32 %v1004_v51, %v1004_v51 }
 0x5b1   :  { %v1007_v61 = vsel %vm206_vm1, %v1005_v58, 0.0  ;;  %v1008_v63 = vsel %vm206_vm1, %v1006_v59, 0.0 }
 0x5b2   :  { %v1009_v0 = vadd.f32 %v1008_v63, %v1007_v61 }
 0x5b4   :  { %1010 = vadd.xlane.f32.xlu1 %v1009_v0 }
 0x63d   :  { %v1011_v1 = vpop.xlane.xlu1 %1010 }
 0x63e   :  { %v1012_v2 = vmul.f32 0.00390625, %v1011_v1 }
 0x640   :  { %v1013_v3 = vadd.f32 1e-05, %v1012_v2 }
 0x642   :  { %1351 = vrsqrt.f32 %v1013_v3 }
 0x64f   :  { %v1352_v6 = vpop.eup %1351 }
 0x650   :  { %v1015_v7 = vmul.f32 %v1352_v6, %v1003_v50  ;;  %v1016_v8 = vmul.f32 %v1352_v6, %v1004_v51 }
 0x652   :  { %v1017_v10 = vmul.f32 %v1015_v7, %v1658_v55  ;;  %v1018_v11 = vmul.f32 %v1016_v8, %v1661_v57 }
 0x654   :  { %v1019_v12 = vadd.f32 %v1017_v10, %v1663_v60  ;;  %v1020_v13 = vadd.f32 %v1018_v11, %v1665_v62 }
 0x656   :  { %v1023_v15 = vcombine.low %v1019_v12, %v1020_v13 }
 0x658   :  { %v1030_v16 = vrot.slane %v1023_v15, %v1029_v14 }
 0x65a   :  { %v1037_v17 = vrot.slane %v1030_v16, %v1029_v14 }
 0x65c   :  { %1043 = vst.msk [vmem:[#allocation6] sm:$0x3] %vm1041_vm2, %v1037_v17 }
 0x65d   :  { %1384 = shalt.err (!%p1381_p9)
}
 0x65e   :  { %1053 = dma.vmem_to_hbm [thread:$0]  %s1051_s17, 32, %s1709_s7, [#allocation5]  }
 0x65f   :  { %1395 = dma.done.wait [#allocation5], 32  }
 0x660   :  { %1396 = vsyncadd [#allocation5], 4294967264 }
 0x661   :  { %1057 = vsyncpa [#allocation4], 1 }
 0x662   :  { %1058 = vsyncpa [#allocation5], 1 }

</bundles_post_ra>
